<compile_context>
chip_gen: v6e
topology: v6e:2x2x1
jax: 0.10.0
libtpu: 0.0.40
codegen_flags: <defaults>
</compile_context>

<pallas_src>
import jax
import jax.numpy as jnp
from jax.experimental import pallas as pl
from jax.experimental.pallas import tpu as pltpu


def _propagator_kernel(a_ref, sin_ref, sout_ref, scur_ref,
                       wa_ref, ba_ref, wx_ref, wtx_ref, out_ref):
    # Per-grid-step block shapes:
    #   a_ref    : (Bblk, N, 2*NE)   adjacency (in | out halves)
    #   sin_ref  : (Bblk, NE, D)     state_in   (matmul dtype)
    #   sout_ref : (Bblk, NE, D)     state_out  (matmul dtype)
    #   scur_ref : (Bblk, N, D)      state_cur  (matmul dtype)
    #   wa_ref   : (2D, 3D)   packed a-part weights [r|z|t]
    #   ba_ref   : (1, 3D)    packed biases         [r|z|t]  (f32)
    #   wx_ref   : (D, 2D)    packed x-part weights [r|z]
    #   wtx_ref  : (D, D)     transform x-part weight
    Bblk, N, D = scur_ref.shape
    NE = sin_ref.shape[1]
    mm_dtype = sin_ref.dtype

    # Split A inside the kernel (static lane slices) -- no host-side copies.
    A_full = a_ref[...]
    A_in = A_full[..., :NE]           # (Bblk, N, NE)
    A_out = A_full[..., NE:]          # (Bblk, N, NE)

    # a_in = bmm(A_in, state_in); a_out = bmm(A_out, state_out). f32 accumulate.
    a_in = jnp.einsum('bnm,bmd->bnd', A_in, sin_ref[...],
                      preferred_element_type=jnp.float32)
    a_out = jnp.einsum('bnm,bmd->bnd', A_out, sout_ref[...],
                       preferred_element_type=jnp.float32)

    # Flatten (Bblk, N, D) -> (Bblk*N, D) so the gate matmuls are single,
    # wide, lane-dense MXU ops shared by all three gates.
    a_in2 = a_in.reshape(Bblk * N, D).astype(mm_dtype)
    a_out2 = a_out.reshape(Bblk * N, D).astype(mm_dtype)
    x_mm = scur_ref[...].reshape(Bblk * N, D)       # matmul dtype
    x_f32 = x_mm.astype(jnp.float32)                # gating math in f32

    # g_a = [a_in, a_out] @ W_a + b_a   -> (Bblk*N, 3D), columns = [r | z | t]
    g_a = (jnp.dot(a_in2, wa_ref[:D, :], preferred_element_type=jnp.float32)
           + jnp.dot(a_out2, wa_ref[D:, :], preferred_element_type=jnp.float32)
           + ba_ref[...])
    # g_x = x @ W_x                     -> (Bblk*N, 2D), columns = [r | z]
    g_x = jnp.dot(x_mm, wx_ref[...], preferred_element_type=jnp.float32)

    r = jax.nn.sigmoid(g_a[:, :D] + g_x[:, :D])
    z = jax.nn.sigmoid(g_a[:, D:2 * D] + g_x[:, D:])
    h_hat = jnp.tanh(
        g_a[:, 2 * D:]
        + jnp.dot((r * x_f32).astype(mm_dtype), wtx_ref[...],
                  preferred_element_type=jnp.float32))

    out = (1.0 - z) * x_f32 + z * h_hat
    out_ref[...] = out.reshape(Bblk, N, D).astype(out_ref.dtype)


def propagator_forward(state_in, state_out, state_cur, A, params,
                       n_nodes, n_edge_types, *,
                       matmul_dtype=jnp.bfloat16,
                       num_batch_blocks=None):
    B, N, D = state_cur.shape
    NE = n_nodes * n_edge_types
    assert N == n_nodes
    assert state_in.shape == (B, NE, D)
    assert state_out.shape == (B, NE, D)
    assert A.shape == (B, N, 2 * NE)

    Wr, br, Wz, bz, Wt, bt = params  # W*: (3D, D) pre-transposed; b*: (D,)

    # Re-pack the gate weights into fewer, wider matmuls.
    W_a = jnp.concatenate([Wr[:2 * D], Wz[:2 * D], Wt[:2 * D]], axis=1)  # (2D,3D)
    W_x = jnp.concatenate([Wr[2 * D:], Wz[2 * D:]], axis=1)              # (D, 2D)
    W_tx = Wt[2 * D:]                                                    # (D, D)
    b_a = jnp.concatenate([br, bz, bt]).reshape(1, 3 * D).astype(jnp.float32)

    # Cast MXU operands (accumulation stays f32 inside the kernel).
    A_mm = A.astype(matmul_dtype)
    sin_mm = state_in.astype(matmul_dtype)
    sout_mm = state_out.astype(matmul_dtype)
    scur_mm = state_cur.astype(matmul_dtype)
    W_a = W_a.astype(matmul_dtype)
    W_x = W_x.astype(matmul_dtype)
    W_tx = W_tx.astype(matmul_dtype)

    if num_batch_blocks is None:
        # 2 parallel grid steps lets v7x use both TensorCores; on v5e/v6e a
        # single step (num_batch_blocks=1) is marginally better.
        num_batch_blocks = min(2, B)
    assert B % num_batch_blocks == 0
    Bblk = B // num_batch_blocks

    def block3(rows, cols):
        return pl.BlockSpec((Bblk, rows, cols), lambda b: (b, 0, 0))

    def full2(shape):
        # Whole-array weight/bias block (constant index map); revisited every
        # grid step but tiny at these sizes.
        return pl.BlockSpec(shape, lambda b: (0, 0))

    mm_bytes = jnp.dtype(matmul_dtype).itemsize
    bytes_accessed = int(
        (A_mm.size + sin_mm.size + sout_mm.size + scur_mm.size
         + W_a.size + W_x.size + W_tx.size) * mm_bytes
        + b_a.size * 4
        + B * N * D * jnp.dtype(state_cur.dtype).itemsize)
    flops = int(
        2 * B * N * NE * D * 2            # a_in, a_out bmms
        + 2 * B * N * D * (3 * D) * 2     # two partial dots into g_a
        + 2 * B * N * D * (2 * D)         # g_x
        + 2 * B * N * D * D)              # (r*x) @ W_tx
    transcendentals = int(3 * B * N * D)  # 2 sigmoids + 1 tanh

    return pl.pallas_call(
        _propagator_kernel,
        out_shape=jax.ShapeDtypeStruct((B, N, D), state_cur.dtype),
        grid=(num_batch_blocks,),
        in_specs=[
            block3(N, 2 * NE),        # A (unsliced)
            block3(NE, D),            # state_in
            block3(NE, D),            # state_out
            block3(N, D),             # state_cur
            full2((2 * D, 3 * D)),    # W_a
            full2((1, 3 * D)),        # b_a
            full2((D, 2 * D)),        # W_x
            full2((D, D)),            # W_tx
        ],
        out_specs=block3(N, D),
        compiler_params=pltpu.CompilerParams(
            dimension_semantics=("parallel",)),
        cost_estimate=pl.CostEstimate(
            flops=flops,
            transcendentals=transcendentals,
            bytes_accessed=bytes_accessed),
    )(A_mm, sin_mm, sout_mm, scur_mm, W_a, b_a, W_x, W_tx)


def _reference(state_in, state_out, state_cur, A, params, n_nodes, n_edge_types):
    NE = n_nodes * n_edge_types
    Wr, br, Wz, bz, Wt, bt = params
    A_in = A[:, :, :NE]
    A_out = A[:, :, NE:]
    a_in = jnp.einsum('bnm,bmd->bnd', A_in, state_in)
    a_out = jnp.einsum('bnm,bmd->bnd', A_out, state_out)
    a = jnp.concatenate((a_in, a_out, state_cur), axis=2)
    r = jax.nn.sigmoid(a @ Wr + br)
    z = jax.nn.sigmoid(a @ Wz + bz)
    joined = jnp.concatenate((a_in, a_out, r * state_cur), axis=2)
    h_hat = jnp.tanh(joined @ Wt + bt)
    return (1.0 - z) * state_cur + z * h_hat


if __name__ == "__main__":
    B = 2
    state_dim = 32
    n_edge_types = 2
    n_nodes = 8
    NE = n_nodes * n_edge_types

    key = jax.random.PRNGKey(0)
    ks = jax.random.split(key, 10)

    state_in = jax.random.normal(ks[0], (B, NE, state_dim), jnp.float32)
    state_out = jax.random.normal(ks[1], (B, NE, state_dim), jnp.float32)
    state_cur = jax.random.normal(ks[2], (B, n_nodes, state_dim), jnp.float32)
    A = jax.random.normal(ks[3], (B, n_nodes, 2 * NE), jnp.float32)

    # nn.Linear(state_dim*3, state_dim) params, stored pre-transposed (3D, D).
    def init_linear(kw, kb):
        bound = 1.0 / jnp.sqrt(3.0 * state_dim)
        W = jax.random.uniform(kw, (3 * state_dim, state_dim), jnp.float32,
                               -bound, bound)
        b = jax.random.uniform(kb, (state_dim,), jnp.float32, -bound, bound)
        return W, b

    Wr, br = init_linear(ks[4], ks[5])
    Wz, bz = init_linear(ks[6], ks[7])
    Wt, bt = init_linear(ks[8], ks[9])
    params = (Wr, br, Wz, bz, Wt, bt)

    ref = _reference(state_in, state_out, state_cur, A, params,
                     n_nodes, n_edge_types)

    # f32 MXU-operand path: tight numerical check.
    out_f32 = propagator_forward(state_in, state_out, state_cur, A, params,
                                 n_nodes, n_edge_types,
                                 matmul_dtype=jnp.float32)
    out_f32 = jax.block_until_ready(out_f32)
    assert out_f32.shape == (B, n_nodes, state_dim)
    assert jnp.allclose(out_f32, ref, atol=1e-5, rtol=1e-5)

    # Default bf16 MXU-operand path (f32 accumulation): looser tolerance vs
    # the pure-f32 reference.
    out_bf16 = propagator_forward(state_in, state_out, state_cur, A, params,
                                  n_nodes, n_edge_types)
    out_bf16 = jax.block_until_ready(out_bf16)
    assert out_bf16.shape == (B, n_nodes, state_dim)
    assert jnp.allclose(out_bf16, ref, atol=2e-1, rtol=5e-2)

    print("KERNEL_OK")
</pallas_src>

<mosaic_0001>
module attributes {stable_mosaic.version = 11 : i64} {
  func.func @_propagator_kernel(%arg0: i32, %arg1: memref<1x8x32xf32, #tpu.memory_space<vmem>>, %arg2: memref<1x16x32xf32, #tpu.memory_space<vmem>>, %arg3: memref<1x16x32xf32, #tpu.memory_space<vmem>>, %arg4: memref<1x8x32xf32, #tpu.memory_space<vmem>>, %arg5: memref<64x96xf32, #tpu.memory_space<vmem>>, %arg6: memref<1x96xf32, #tpu.memory_space<vmem>>, %arg7: memref<32x64xf32, #tpu.memory_space<vmem>>, %arg8: memref<32x32xf32, #tpu.memory_space<vmem>>, %arg9: memref<1x8x32xf32, #tpu.memory_space<vmem>>) attributes {dimension_semantics = [#tpu.dimension_semantics<parallel>], iteration_bounds = array<i64: 2>, scalar_prefetch = 0 : i64, scratch_operands = 0 : i64, tpu.core_type = #tpu.core_type<tc>, window_params = [{transform_indices = @transform_0, window_bounds = array<i64: 1, 8, 32>}, {transform_indices = @transform_1, window_bounds = array<i64: 1, 16, 32>}, {transform_indices = @transform_2, window_bounds = array<i64: 1, 16, 32>}, {transform_indices = @transform_3, window_bounds = array<i64: 1, 8, 32>}, {pipeline_mode = #tpu.pipeline_mode<synchronous>, transform_indices = @transform_4, window_bounds = array<i64: 64, 96>}, {pipeline_mode = #tpu.pipeline_mode<synchronous>, transform_indices = @transform_5, window_bounds = array<i64: 1, 96>}, {pipeline_mode = #tpu.pipeline_mode<synchronous>, transform_indices = @transform_6, window_bounds = array<i64: 32, 64>}, {pipeline_mode = #tpu.pipeline_mode<synchronous>, transform_indices = @transform_7, window_bounds = array<i64: 32, 32>}, {transform_indices = @transform_8, window_bounds = array<i64: 1, 8, 32>}]} {
    %c0 = arith.constant 0 : index
    %c0_0 = arith.constant 0 : index
    %c0_1 = arith.constant 0 : index
    %0 = vector.load %arg1[%c0, %c0_0, %c0_1] : memref<1x8x32xf32, #tpu.memory_space<vmem>>, vector<1x8x32xf32>
    %1 = vector.extract_strided_slice %0 {offsets = [0, 0, 0], sizes = [1, 8, 16], strides = [1, 1, 1]} : vector<1x8x32xf32> to vector<1x8x16xf32>
    %2 = vector.extract_strided_slice %0 {offsets = [0, 0, 16], sizes = [1, 8, 16], strides = [1, 1, 1]} : vector<1x8x32xf32> to vector<1x8x16xf32>
    %c0_2 = arith.constant 0 : index
    %c0_3 = arith.constant 0 : index
    %c0_4 = arith.constant 0 : index
    %3 = vector.load %arg2[%c0_2, %c0_3, %c0_4] : memref<1x16x32xf32, #tpu.memory_space<vmem>>, vector<1x16x32xf32>
    "tpu.trace_start"() <{level = 10 : i32, message = "bnm,bmd->bnd"}> : () -> ()
    %cst = arith.constant dense<0.000000e+00> : vector<1x8x32xf32>
    %4 = tpu.matmul %1, %3, %cst {dimension_numbers = #tpu.dot_dimension_numbers<[2], [1], [1], [2], [0, 0, 0, 1, 1, 2], [0], [0]>} : vector<1x8x16xf32>, vector<1x16x32xf32>, vector<1x8x32xf32> -> vector<1x8x32xf32>
    "tpu.trace_stop"() : () -> ()
    %c0_5 = arith.constant 0 : index
    %c0_6 = arith.constant 0 : index
    %c0_7 = arith.constant 0 : index
    %5 = vector.load %arg3[%c0_5, %c0_6, %c0_7] : memref<1x16x32xf32, #tpu.memory_space<vmem>>, vector<1x16x32xf32>
    "tpu.trace_start"() <{level = 10 : i32, message = "bnm,bmd->bnd"}> : () -> ()
    %cst_8 = arith.constant dense<0.000000e+00> : vector<1x8x32xf32>
    %6 = tpu.matmul %2, %5, %cst_8 {dimension_numbers = #tpu.dot_dimension_numbers<[2], [1], [1], [2], [0, 0, 0, 1, 1, 2], [0], [0]>} : vector<1x8x16xf32>, vector<1x16x32xf32>, vector<1x8x32xf32> -> vector<1x8x32xf32>
    "tpu.trace_stop"() : () -> ()
    %7 = vector.shape_cast %4 : vector<1x8x32xf32> to vector<8x32xf32>
    %8 = vector.shape_cast %6 : vector<1x8x32xf32> to vector<8x32xf32>
    %c0_9 = arith.constant 0 : index
    %c0_10 = arith.constant 0 : index
    %c0_11 = arith.constant 0 : index
    %9 = vector.load %arg4[%c0_9, %c0_10, %c0_11] : memref<1x8x32xf32, #tpu.memory_space<vmem>>, vector<1x8x32xf32>
    %10 = vector.shape_cast %9 : vector<1x8x32xf32> to vector<8x32xf32>
    %c0_12 = arith.constant 0 : index
    %c0_13 = arith.constant 0 : index
    %11 = vector.load %arg5[%c0_12, %c0_13] : memref<64x96xf32, #tpu.memory_space<vmem>>, vector<32x96xf32>
    %cst_14 = arith.constant dense<0.000000e+00> : vector<8x96xf32>
    %12 = tpu.matmul %7, %11, %cst_14 {dimension_numbers = #tpu.dot_dimension_numbers<[1], [0], [0], [1], [0, 0, 1, 1], [], []>} : vector<8x32xf32>, vector<32x96xf32>, vector<8x96xf32> -> vector<8x96xf32>
    %c32 = arith.constant 32 : index
    %c0_15 = arith.constant 0 : index
    %13 = vector.load %arg5[%c32, %c0_15] : memref<64x96xf32, #tpu.memory_space<vmem>>, vector<32x96xf32>
    %cst_16 = arith.constant dense<0.000000e+00> : vector<8x96xf32>
    %14 = tpu.matmul %8, %13, %cst_16 {dimension_numbers = #tpu.dot_dimension_numbers<[1], [0], [0], [1], [0, 0, 1, 1], [], []>} : vector<8x32xf32>, vector<32x96xf32>, vector<8x96xf32> -> vector<8x96xf32>
    %15 = arith.addf %12, %14 : vector<8x96xf32>
    %c0_17 = arith.constant 0 : index
    %c0_18 = arith.constant 0 : index
    %16 = vector.load %arg6[%c0_17, %c0_18] : memref<1x96xf32, #tpu.memory_space<vmem>>, vector<1x96xf32>
    %17 = vector.broadcast %16 : vector<1x96xf32> to vector<8x96xf32>
    %18 = arith.addf %15, %17 : vector<8x96xf32>
    %c0_19 = arith.constant 0 : index
    %c0_20 = arith.constant 0 : index
    %19 = vector.load %arg7[%c0_19, %c0_20] : memref<32x64xf32, #tpu.memory_space<vmem>>, vector<32x64xf32>
    %cst_21 = arith.constant dense<0.000000e+00> : vector<8x64xf32>
    %20 = tpu.matmul %10, %19, %cst_21 {dimension_numbers = #tpu.dot_dimension_numbers<[1], [0], [0], [1], [0, 0, 1, 1], [], []>} : vector<8x32xf32>, vector<32x64xf32>, vector<8x64xf32> -> vector<8x64xf32>
    %21 = vector.extract_strided_slice %18 {offsets = [0, 0], sizes = [8, 32], strides = [1, 1]} : vector<8x96xf32> to vector<8x32xf32>
    %22 = vector.extract_strided_slice %20 {offsets = [0, 0], sizes = [8, 32], strides = [1, 1]} : vector<8x64xf32> to vector<8x32xf32>
    %23 = arith.addf %21, %22 : vector<8x32xf32>
    %24 = arith.negf %23 : vector<8x32xf32>
    %25 = math.exp %24 : vector<8x32xf32>
    %cst_22 = arith.constant 1.000000e+00 : f32
    %26 = vector.broadcast %cst_22 : f32 to vector<8x32xf32>
    %27 = arith.addf %26, %25 : vector<8x32xf32>
    %28 = arith.divf %26, %27 : vector<8x32xf32>
    %29 = vector.extract_strided_slice %18 {offsets = [0, 32], sizes = [8, 32], strides = [1, 1]} : vector<8x96xf32> to vector<8x32xf32>
    %30 = vector.extract_strided_slice %20 {offsets = [0, 32], sizes = [8, 32], strides = [1, 1]} : vector<8x64xf32> to vector<8x32xf32>
    %31 = arith.addf %29, %30 : vector<8x32xf32>
    %32 = arith.negf %31 : vector<8x32xf32>
    %33 = math.exp %32 : vector<8x32xf32>
    %cst_23 = arith.constant 1.000000e+00 : f32
    %34 = vector.broadcast %cst_23 : f32 to vector<8x32xf32>
    %35 = arith.addf %34, %33 : vector<8x32xf32>
    %36 = arith.divf %34, %35 : vector<8x32xf32>
    %37 = vector.extract_strided_slice %18 {offsets = [0, 64], sizes = [8, 32], strides = [1, 1]} : vector<8x96xf32> to vector<8x32xf32>
    %38 = arith.mulf %28, %10 : vector<8x32xf32>
    %c0_24 = arith.constant 0 : index
    %c0_25 = arith.constant 0 : index
    %39 = vector.load %arg8[%c0_24, %c0_25] : memref<32x32xf32, #tpu.memory_space<vmem>>, vector<32x32xf32>
    %cst_26 = arith.constant dense<0.000000e+00> : vector<8x32xf32>
    %40 = tpu.matmul %38, %39, %cst_26 {dimension_numbers = #tpu.dot_dimension_numbers<[1], [0], [0], [1], [0, 0, 1, 1], [], []>} : vector<8x32xf32>, vector<32x32xf32>, vector<8x32xf32> -> vector<8x32xf32>
    %41 = arith.addf %37, %40 : vector<8x32xf32>
    %42 = math.tanh %41 : vector<8x32xf32>
    %cst_27 = arith.constant 1.000000e+00 : f32
    %43 = vector.broadcast %cst_27 : f32 to vector<8x32xf32>
    %44 = arith.subf %43, %36 : vector<8x32xf32>
    %45 = arith.mulf %44, %10 : vector<8x32xf32>
    %46 = arith.mulf %36, %42 : vector<8x32xf32>
    %47 = arith.addf %45, %46 : vector<8x32xf32>
    %48 = vector.shape_cast %47 : vector<8x32xf32> to vector<1x8x32xf32>
    %c0_28 = arith.constant 0 : index
    %c0_29 = arith.constant 0 : index
    %c0_30 = arith.constant 0 : index
    %49 = vector.load %arg9[%c0_28, %c0_29, %c0_30] : memref<1x8x32xf32, #tpu.memory_space<vmem>>, vector<1x8x32xf32>
    tpu.vector_store %arg9[%c0_28, %c0_29, %c0_30], %48 {strides = array<i32>} : memref<1x8x32xf32, #tpu.memory_space<vmem>>, vector<1x8x32xf32>,
    return
  }
  func.func @transform_0(%arg0: i32) -> (i32, i32, i32) {
    %c0_i32 = arith.constant 0 : i32
    %c0_i32_0 = arith.constant 0 : i32
    %c0_i32_1 = arith.constant 0 : i32
    return %arg0, %c0_i32, %c0_i32_0 : i32, i32, i32
  }
  func.func @transform_1(%arg0: i32) -> (i32, i32, i32) {
    %c0_i32 = arith.constant 0 : i32
    %c0_i32_0 = arith.constant 0 : i32
    %c0_i32_1 = arith.constant 0 : i32
    return %arg0, %c0_i32, %c0_i32_0 : i32, i32, i32
  }
  func.func @transform_2(%arg0: i32) -> (i32, i32, i32) {
    %c0_i32 = arith.constant 0 : i32
    %c0_i32_0 = arith.constant 0 : i32
    %c0_i32_1 = arith.constant 0 : i32
    return %arg0, %c0_i32, %c0_i32_0 : i32, i32, i32
  }
  func.func @transform_3(%arg0: i32) -> (i32, i32, i32) {
    %c0_i32 = arith.constant 0 : i32
    %c0_i32_0 = arith.constant 0 : i32
    %c0_i32_1 = arith.constant 0 : i32
    return %arg0, %c0_i32, %c0_i32_0 : i32, i32, i32
  }
  func.func @transform_4(%arg0: i32) -> (i32, i32) {
    %c0_i32 = arith.constant 0 : i32
    %c0_i32_0 = arith.constant 0 : i32
    %c0_i32_1 = arith.constant 0 : i32
    return %c0_i32, %c0_i32_0 : i32, i32
  }
  func.func @transform_5(%arg0: i32) -> (i32, i32) {
    %c0_i32 = arith.constant 0 : i32
    %c0_i32_0 = arith.constant 0 : i32
    %c0_i32_1 = arith.constant 0 : i32
    return %c0_i32, %c0_i32_0 : i32, i32
  }
  func.func @transform_6(%arg0: i32) -> (i32, i32) {
    %c0_i32 = arith.constant 0 : i32
    %c0_i32_0 = arith.constant 0 : i32
    %c0_i32_1 = arith.constant 0 : i32
    return %c0_i32, %c0_i32_0 : i32, i32
  }
  func.func @transform_7(%arg0: i32) -> (i32, i32) {
    %c0_i32 = arith.constant 0 : i32
    %c0_i32_0 = arith.constant 0 : i32
    %c0_i32_1 = arith.constant 0 : i32
    return %c0_i32, %c0_i32_0 : i32, i32
  }
  func.func @transform_8(%arg0: i32) -> (i32, i32, i32) {
    %c0_i32 = arith.constant 0 : i32
    %c0_i32_0 = arith.constant 0 : i32
    %c0_i32_1 = arith.constant 0 : i32
    return %arg0, %c0_i32, %c0_i32_0 : i32, i32, i32
  }
}

</mosaic_0001>

<bundles_post_ra>
// kernel: tpu_custom_call.1
= control target key start
LH: loop header
LB: loop body
LE: loop exit
PB: predicated region body
PF: predicated region fallthrough
CT: control target
= control target key end

     0   :  { %s2092_s0 = inlined_call_operand.hbm [shape: f32[2,8,32], index: 0, kind: input, shape index: {}]   ;;  %s2093_s1 = inlined_call_operand.hbm [shape: f32[2,16,32], index: 1, kind: input, shape index: {}]   ;;  %s2094_s2 = inlined_call_operand.hbm [shape: f32[2,16,32], index: 2, kind: input, shape index: {}]   ;;  %s2095_s3 = inlined_call_operand.hbm [shape: f32[2,8,32], index: 3, kind: input, shape index: {}]   ;;  %s2096_s4 = inlined_call_operand.hbm [shape: f32[64,96], index: 4, kind: input, shape index: {}]   ;;  %s2097_s5 = inlined_call_operand.vmem [shape: f32[1,96], index: 5, kind: input, shape index: {}]   ;;  %s2098_s6 = inlined_call_operand.hbm [shape: f32[32,64], index: 6, kind: input, shape index: {}]   ;;  %s2099_s7 = inlined_call_operand.hbm [shape: f32[32,32], index: 7, kind: input, shape index: {}]   ;;  %s2100_s8 = inlined_call_operand.hbm [shape: f32[2,8,32], index: 8, kind: output, shape index: {}]  }
   0x1   :  { %2123 = sst [smem:[#allocation27_spill]] %s2093_s1 }
   0x2   :  { %2124 = sst [smem:[#allocation28_spill]] %s2096_s4 }
   0x3   :  { %2125 = sst [smem:[#allocation29_spill]] %s2097_s5 }
   0x4   :  { %2126 = sst [smem:[#allocation30_spill]] %s2098_s6 }
   0x5   :  { %2127 = sst [smem:[#allocation31_spill]] %s2099_s7 }
   0x6   :  { %2128 = sst [smem:[#allocation32_spill]] %s2100_s8 }
   0x7   :  { %13 = vsyncpa [#allocation3], 0 }
   0x8   :  { %15 = vsyncpa [#allocation3 + $0x1], 0 }
   0x9   :  { %16 = vsyncpa [#allocation6], 0 }
   0xa   :  { %18 = vsyncpa [#allocation6 + $0x1], 0 }
   0xb   :  { %19 = vsyncpa [#allocation9], 0 }
   0xc   :  { %21 = vsyncpa [#allocation9 + $0x1], 0 }
   0xd   :  { %22 = vsyncpa [#allocation12], 0 }
   0xe   :  { %23 = vsyncpa [#allocation4], 0 }
   0xf   :  { %25 = vsyncpa [#allocation4 + $0x1], 0  ;;  %s1719_s27 = smov 0   ;;  %s1721_s28 = smov 0  }
  0x10   :  { %s1723_s29 = smov 0   ;;  %s1725_s30 = smov 0  }
  0x11 LB: > { %2129 = sst [smem:[#allocation21_spill]] %s1644_s27  ;;  %s1740_s9 = sadd.s32 4294967295, %s1656_s30   ;;  %s1656_s30 = sphi %s1725_s30, %s2168_s30   ;;  %s1652_s29 = sphi %s1723_s29, %s2170_s29   ;;  %s1648_s28 = sphi %s1721_s28, %s2172_s28   ;;  %s1644_s27 = sphi %s1719_s27, %s2171_s27  }
  0x12   : > { %2130 = sst [smem:[#allocation22_spill]] %s1652_s29  ;;  %s1157_s10 = sadd.s32 4294967294, %s1656_s30  }
  0x13   : > { %s1744_s11 = sadd.s32 1, %s1656_s30   ;;  %s38_s12 = sadd.s32 1, %s1652_s29 }
  0x14   : > { %2131 = sst [smem:[#allocation23_spill]] %s1744_s11  ;;  %s35_s13 = ssub.s32 %s1656_s30, %s1744_s11 }
  0x15   : > { %p45_p0 = scmp.ne.s32.totalorder %s1652_s29, %s1648_s28  ;;  %p36_p1 = scmp.eq.s32.totalorder %s35_s13, 0 }
  0x16   : > { %p46_p2 = scmp.eq.s32.totalorder %s1656_s30, 0  ;;  %p51_p3 = scmp.ne.s32.totalorder %s1648_s28, %s1644_s27 }
  0x17   : > { %p2102_p4 = scmp.eq.s32.totalorder %s1740_s9, 0  ;;  %p237_p7 = scmp.eq.s32.totalorder %s1740_s9, 1 }
  0x18   : > { %s1756_s14 = scalar_select %p36_p1, %s1652_s29, %s38_s12  }
  0x19   : > { %p1758_p5 = por %p46_p2, %p45_p0  ;;  %p1764_p6 = por %p2102_p4, %p51_p3 }
  0x1a   : > { %2132 = sst [smem:[#allocation24_spill]] %s1756_s14  ;;  %p243_p8 = scmp.eq.s32.totalorder %s1157_s10, 1 }
  0x1b   : > { %s2134_s16 = scalar_select %p1764_p6, 1, 0 }
  0x1c   : > { %p1158_p9 = scmp.ge.s32.totalorder %s1656_s30, 1  ;;  %p250_p10 = scmp.lt.s32.totalorder %s1656_s30, 3 }
  0x1d   : > { %p1771_p11 = por %p237_p7, %p45_p0  ;;  %p1775_p12 = por %p243_p8, %p51_p3 }
  0x1e   : > { %p1779_p13 = pnand %p1158_p9, %p250_p10  ;;  %s1658_s20 = smov [#allocation10]  }
  0x1f   : > { %s2135_s17 = scalar_select %p1771_p11, 1, 0 }
  0x20   : > { %s2137_s18 = scalar_select %p1775_p12, 1, 0 }
  0x21   : > { %2136 = sst [smem:[#allocation25_spill]] %s2135_s17  ;;  %p1302_p1 = pneg %p1779_p13 }
  0x22   : > { %2138 = sst [smem:[#allocation26_spill]] %s2137_s18  ;;  %s262_s21 = sshll.u32 %s1658_s20, 4  ;;  %s263_s21 = int_to_ptr.vmem [resolvable:$true] %s262_s21 }
  0x23   : > { %s2139_s19 = scalar_select %p1779_p13, 1, 0 }
  0x24   : > { %p1787_p2 = pnand %p1302_p1, %p2102_p4  ;;  %p1332_p3 = scmp.lt.s32.totalorder %s1656_s30, 2 }
  0x25   : > { %s1659_s23 = smov [#allocation11]   ;;  %s1397_s25 = scalar_lea.vmem %s263_s21, 1024 }
  0x26   : > { %s2140_s22 = scalar_select %p1787_p2, 1, 0 }
  0x27   : > { %s278_s24 = sshll.u32 %s1659_s23, 4  ;;  %p2113_p7 = pneg %p1787_p2  ;;  %s279_s24 = int_to_ptr.vmem [resolvable:$true] %s278_s24 }
  0x28   : > { %p1398_p8 = scmp.ne.s32.totalorder %s263_s21, %s1397_s25  ;;  %p1405_p12 = scmp.lt.s32.totalorder %s263_s21, %s263_s21 }
  0x29   : > { %p1406_p11 = scmp.lt.s32.totalorder %s1397_s25, %s1397_s25 }
  0x2a   : > { %p1400_p9 = pnand %p1398_p8, %p2113_p7 }
  0x2b   : > { %p1407_p1 = por %p1406_p11, %p1405_p12 }
  0x2c   : > { %p1401_p10 = pneg %p1400_p9 }
  0x2e   : > { %p1408_p4 = pnand %p1407_p1, %p1401_p10 }
  0x30   : > { %1411 = shalt.err (!%p1408_p4)
}
  0x31   : > { %s2108_s26 = smov 128   ;;  %s2111_s10 = smov 8  }
  0x32   : > { %s2141_s4 = sld [smem:[#allocation28_spill]]  ;;  %s1807_s20 = sand.u32 1, %s1652_s29  }
  0x33   : > { %s1423_s23 = scalar_lea.vmem %s279_s24, 512  ;;  %p1431_p8 = scmp.lt.s32.totalorder %s279_s24, %s279_s24 }
  0x34   : > { %p1424_p11 = scmp.ne.s32.totalorder %s279_s24, %s1423_s23  ;;  %p1432_p9 = scmp.lt.s32.totalorder %s1423_s23, %s1423_s23 }
  0x36   : > { %p1426_p4 = pnand %p1424_p11, %p2113_p7  ;;  %p1433_p10 = por %p1432_p9, %p1431_p8 }
  0x38   : > { %1305 = dma.hbm_to_vmem [thread:$0]  (!%p1787_p2), %s2141_s4, 1024, %s263_s21, [#allocation9], %s2108_s26, %s2108_s26, %s2111_s10  }
  0x39   : > { %p1427_p12 = pneg %p1426_p4 }
  0x3b   : > { %p1434_p1 = pnand %p1433_p10, %p1427_p12 }
  0x3d   : > { %1437 = shalt.err (!%p1434_p1)
}
  0x3e   : > { %s2142_s6 = sld [smem:[#allocation30_spill]]  ;;  %p1824_p11 = pnand %p1332_p3, %p1758_p5 }
  0x3f   : > { %s2110_s13 = sand.u32 1, %s1656_s30   ;;  %s2106_s23 = sshll.u32 %s1807_s20, 4 }
  0x40   : > { %s2107_s4 = sshll.u32 %s1656_s30, 8  ;;  %s327_s21 = scalar_lea.vmem [#allocation5], %s2106_s23 }
  0x41   : > { %s334_s25 = sshll.u32 %s327_s21, 4  ;;  %s2144_s1 = sld [smem:[#allocation27_spill]]  ;;  %s1840_s25 = int_to_ptr.vmem [resolvable:$true] %s334_s25 }
  0x42   : > { %s1844_s15 = scalar_lea.sflag [#allocation6], %s2110_s13  ;;  %p1850_p3 = pneg %p1824_p11 }
  0x44   : > { %1308 = dma.hbm_to_vmem [thread:$0]  (!%p1787_p2), %s2142_s6, 512, %s279_s24, [#allocation12], %s2108_s26, %s2108_s26, %s2111_s10  }
  0x47   : > { %s1838_s11 = scalar_lea.hbm %s2144_s1, %s2107_s4  ;;  %s1443_s21 = scalar_lea.hbm %s2144_s1, 512 }
  0x48   : > { %s1438_s24 = scalar_lea.hbm %s1838_s11, 256  ;;  %p1444_p8 = scmp.lt.s32.totalorder %s1838_s11, %s2144_s1 }
  0x49   : > { %p1439_p5 = scmp.ne.s32.totalorder %s1838_s11, %s1438_s24  ;;  %p1445_p9 = scmp.lt.s32.totalorder %s1443_s21, %s1438_s24 }
  0x4b   : > { %p1441_p4 = pnand %p1850_p3, %p1439_p5  ;;  %p1446_p10 = por %p1445_p9, %p1444_p8 }
  0x4d   : > { %p1442_p12 = pneg %p1441_p4 }
  0x4f   : > { %p1447_p1 = pnand %p1446_p10, %p1442_p12 }
  0x51   : > { %1450 = shalt.err (!%p1447_p1)
}
  0x52   : > { %s1451_s13 = scalar_lea.vmem %s1840_s25, 256  ;;  %s1662_s10 = smov [#allocation5]  }
  0x53   : > { %p1452_p0 = scmp.ne.s32.totalorder %s1840_s25, %s1451_s13  ;;  %s1456_s29 = sshll.u32 %s1662_s10, 4  ;;  %s1457_s29 = int_to_ptr.vmem [resolvable:$false] %s1456_s29 }
  0x54   : > { %s1458_s14 = scalar_lea.vmem %s1457_s29, 512  ;;  %p1459_p7 = scmp.lt.s32.totalorder %s1840_s25, %s1457_s29 }
  0x55   : > { %p1454_p5 = pnand %p1452_p0, %p1850_p3  ;;  %p1460_p6 = scmp.lt.s32.totalorder %s1458_s14, %s1451_s13 }
  0x57   : > { %p1455_p4 = pneg %p1454_p5  ;;  %p1461_p13 = por %p1460_p6, %p1459_p7 }
  0x59   : > { %p1462_p2 = pnand %p1461_p13, %p1455_p4 }
  0x5b   : > { %1465 = shalt.err (!%p1462_p2)
}
  0x5c   : > { %s2146_s4 = smov 8   ;;  %s2147_s26 = smov 128  }
  0x5d   : > { %1318 = dma.hbm_to_vmem [thread:$0]  (!%p1824_p11), %s1838_s11, 256, %s1840_s25, %s1844_s15, %s2147_s26, %s2147_s26, %s2146_s4  }
  0x5e   : > { %s2148_s10 = sshll.u32 %s1656_s30, 8  ;;  %s2149_s29 = sshll.u32 %s1807_s20, 4 }
  0x5f   : > { %s1881_s13 = scalar_lea.hbm %s2094_s2, %s2148_s10  ;;  %s348_s14 = scalar_lea.vmem [#allocation7], %s2149_s29 }
  0x60   : > { %s355_s1 = sshll.u32 %s348_s14, 4  ;;  %s1663_s6 = smov [#allocation13]   ;;  %s1885_s1 = int_to_ptr.vmem [resolvable:$true] %s355_s1 }
  0x61   : > { %s291_s18 = sshll.u32 %s1663_s6, 4  ;;  %p2150_p13 = scmp.ne.s32.totalorder %s2140_s22, 0  ;;  %s292_s18 = int_to_ptr.vmem [resolvable:$true] %s291_s18 }
  0x62   : > { %s1477_s27 = scalar_lea.vmem %s292_s18, 512  ;;  %p1485_p12 = scmp.lt.s32.totalorder %s292_s18, %s292_s18 }
  0x63   : > { %p1478_p6 = scmp.ne.s32.totalorder %s292_s18, %s1477_s27  ;;  %p2151_p2 = pneg %p2150_p13 }
  0x64   : > { %p1486_p8 = scmp.lt.s32.totalorder %s1477_s27, %s1477_s27 }
  0x65   : > { %p1480_p0 = pnand %p1478_p6, %p2151_p2 }
  0x66   : > { %p1487_p9 = por %p1486_p8, %p1485_p12 }
  0x67   : > { %p1481_p7 = pneg %p1480_p0 }
  0x69   : > { %p1488_p10 = pnand %p1487_p9, %p1481_p7 }
  0x6b   : > { %1491 = shalt.err (!%p1488_p10)
}
  0x6c   : > { %s2152_s7 = sld [smem:[#allocation31_spill]]  ;;  %s1163_s6 = sshll.u32 %s1807_s20, 3 }
  0x6d   : > { %s1164_s10 = sshll.u32 %s1656_s30, 7  ;;  %s309_s22 = scalar_lea.vmem [#allocation2], %s1163_s6 }
  0x6e   : > { %s1903_s21 = scalar_lea.hbm %s2092_s0, %s1164_s10  ;;  %s316_s29 = sshll.u32 %s309_s22, 4  ;;  %s317_s29 = int_to_ptr.vmem [resolvable:$true] %s316_s29 }
  0x6f   : > { %s1910_s25 = scalar_lea.hbm %s2095_s3, %s1164_s10  ;;  %s1497_s8 = scalar_lea.hbm %s2092_s0, 256 }
  0x70   : > { %p1498_p6 = scmp.lt.s32.totalorder %s1903_s21, %s2092_s0 }
  0x72   : > { %1311 = dma.hbm_to_vmem [thread:$0]  (!%p2150_p13), %s2152_s7, 512, %s292_s18, [#allocation12], %s2147_s26, %s2147_s26, %s2146_s4  }
  0x73   : > { %s306_s18 = scalar_lea.sflag [#allocation3], %s1807_s20  ;;  %s1492_s7 = scalar_lea.hbm %s1903_s21, 128 }
  0x74   : > { %p1493_p1 = scmp.ne.s32.totalorder %s1903_s21, %s1492_s7  ;;  %p1499_p13 = scmp.lt.s32.totalorder %s1497_s8, %s1492_s7 }
  0x76   : > { %p1495_p5 = pnand %p1493_p1, %p1850_p3  ;;  %p1500_p2 = por %p1499_p13, %p1498_p6 }
  0x78   : > { %p1496_p4 = pneg %p1495_p5 }
  0x7a   : > { %p1501_p0 = pnand %p1500_p2, %p1496_p4 }
  0x7c   : > { %1504 = shalt.err (!%p1501_p0)
}
  0x7d   : > { %s1505_s10 = scalar_lea.vmem %s317_s29, 128  ;;  %s1664_s22 = smov [#allocation2]  }
  0x7e   : > { %p1506_p7 = scmp.ne.s32.totalorder %s317_s29, %s1505_s10  ;;  %s1510_s14 = sshll.u32 %s1664_s22, 4  ;;  %s1511_s14 = int_to_ptr.vmem [resolvable:$false] %s1510_s14 }
  0x7f   : > { %s1512_s11 = scalar_lea.vmem %s1511_s14, 256  ;;  %p1513_p9 = scmp.lt.s32.totalorder %s317_s29, %s1511_s14 }
  0x80   : > { %p1508_p12 = pnand %p1506_p7, %p1850_p3  ;;  %p1514_p10 = scmp.lt.s32.totalorder %s1512_s11, %s1505_s10 }
  0x82   : > { %p1509_p8 = pneg %p1508_p12  ;;  %p1515_p1 = por %p1514_p10, %p1513_p9 }
  0x84   : > { %p1516_p5 = pnand %p1515_p1, %p1509_p8 }
  0x86   : > { %1519 = shalt.err (!%p1516_p5)
}
  0x87   : > { %1315 = dma.hbm_to_vmem [thread:$0]  (!%p1824_p11), %s1903_s21, 128, %s317_s29, %s306_s18  }
  0x88   : > { %s1520_s5 = scalar_lea.hbm %s1881_s13, 256  ;;  %s1525_s17 = scalar_lea.hbm %s2094_s2, 512 }
  0x89   : > { %p1521_p4 = scmp.ne.s32.totalorder %s1881_s13, %s1520_s5  ;;  %p1526_p2 = scmp.lt.s32.totalorder %s1881_s13, %s2094_s2 }
  0x8a   : > { %p1527_p0 = scmp.lt.s32.totalorder %s1525_s17, %s1520_s5 }
  0x8b   : > { %p1523_p6 = pnand %p1521_p4, %p1850_p3 }
  0x8c   : > { %p1528_p7 = por %p1527_p0, %p1526_p2 }
  0x8d   : > { %p1524_p13 = pneg %p1523_p6 }
  0x8f   : > { %p1529_p12 = pnand %p1528_p7, %p1524_p13 }
  0x91   : > { %1532 = shalt.err (!%p1529_p12)
}
  0x92   : > { %s1533_s21 = scalar_lea.vmem %s1885_s1, 256  ;;  %s1665_s29 = smov [#allocation7]  }
  0x93   : > { %p1534_p8 = scmp.ne.s32.totalorder %s1885_s1, %s1533_s21  ;;  %s1538_s18 = sshll.u32 %s1665_s29, 4  ;;  %s1539_s18 = int_to_ptr.vmem [resolvable:$false] %s1538_s18 }
  0x94   : > { %s1540_s10 = scalar_lea.vmem %s1539_s18, 512  ;;  %p1541_p1 = scmp.lt.s32.totalorder %s1885_s1, %s1539_s18 }
  0x95   : > { %p1536_p9 = pnand %p1534_p8, %p1850_p3  ;;  %p1542_p5 = scmp.lt.s32.totalorder %s1540_s10, %s1533_s21 }
  0x97   : > { %p1537_p10 = pneg %p1536_p9  ;;  %p1543_p4 = por %p1542_p5, %p1541_p1 }
  0x99   : > { %p1544_p6 = pnand %p1543_p4, %p1537_p10 }
  0x9b   : > { %1547 = shalt.err (!%p1544_p6)
}
  0x9c   : > { %1321 = dma.hbm_to_vmem [thread:$0]  (!%p1824_p11), %s1881_s13, 256, %s1885_s1, %s1844_s15, %s2147_s26, %s2147_s26, %s2146_s4  }
  0x9d   : > { %s369_s22 = scalar_lea.vmem [#allocation8], %s1163_s6  ;;  %s2153_s11 = sand.u32 1, %s1656_s30  }
  0x9e   : > { %s376_s14 = sshll.u32 %s369_s22, 4  ;;  %s366_s5 = scalar_lea.sflag [#allocation9], %s2153_s11  ;;  %s377_s14 = int_to_ptr.vmem [resolvable:$true] %s376_s14 }
  0x9f   : > { %s1548_s7 = scalar_lea.hbm %s1910_s25, 128  ;;  %s1553_s27 = scalar_lea.hbm %s2095_s3, 256 }
  0xa0   : > { %p1549_p13 = scmp.ne.s32.totalorder %s1910_s25, %s1548_s7  ;;  %p1554_p7 = scmp.lt.s32.totalorder %s1910_s25, %s2095_s3 }
  0xa1   : > { %p1555_p12 = scmp.lt.s32.totalorder %s1553_s27, %s1548_s7 }
  0xa2   : > { %p1551_p2 = pnand %p1549_p13, %p1850_p3 }
  0xa3   : > { %p1556_p8 = por %p1555_p12, %p1554_p7 }
  0xa4   : > { %p1552_p0 = pneg %p1551_p2 }
  0xa6   : > { %p1557_p9 = pnand %p1556_p8, %p1552_p0 }
  0xa8   : > { %1560 = shalt.err (!%p1557_p9)
}
  0xa9   : > { %s1561_s1 = scalar_lea.vmem %s377_s14, 128  ;;  %s1666_s20 = smov [#allocation8]  }
  0xaa   : > { %p1562_p10 = scmp.ne.s32.totalorder %s377_s14, %s1561_s1  ;;  %s1566_s15 = sshll.u32 %s1666_s20, 4  ;;  %s1567_s15 = int_to_ptr.vmem [resolvable:$false] %s1566_s15 }
  0xab   : > { %s1568_s4 = scalar_lea.vmem %s1567_s15, 256  ;;  %p1569_p4 = scmp.lt.s32.totalorder %s377_s14, %s1567_s15 }
  0xac   : > { %p1564_p1 = pnand %p1562_p10, %p1850_p3  ;;  %p1570_p6 = scmp.lt.s32.totalorder %s1568_s4, %s1561_s1 }
  0xae   : > { %p1565_p5 = pneg %p1564_p1  ;;  %p1571_p13 = por %p1570_p6, %p1569_p4 }
  0xb0   : > { %p1572_p2 = pnand %p1571_p13, %p1565_p5 }
  0xb2   : > { %1575 = shalt.err (!%p1572_p2)
}
  0xb3   : > { %1324 = dma.hbm_to_vmem [thread:$0]  (!%p1824_p11), %s1910_s25, 128, %s377_s14, %s366_s5  }
  0xb4   : > { %p2154_p0 = scmp.ne.s32.totalorder %s2139_s19, 0 }
  0xb5   : > { %s1976_s23 = sand.u32 (!%p2154_p0), 1, %s1648_s28   ;;  %p2155_p3 = scmp.ne.s32.totalorder (!%p2154_p0), %s2134_s16, 0 }
  0xb6   : > { %385 = sbr.rel (%p2154_p0) target bundleno = 1320 (0x528), region = 52  ;;  %s1979_s26 = sshll.u32 (!%p2154_p0), %s1976_s23, 3 }
  0xb7   : > { %s388_s13 = scalar_lea.sflag (!%p2154_p0), [#allocation3], %s1976_s23  ;;  %s391_s6 = scalar_lea.vmem (!%p2154_p0), [#allocation2], %s1979_s26 }
  0xbb   : > { %1619 = dma.done.wait (%p2155_p3), %s388_s13, 128  }
  0xbc   : > { %1621 = vsyncadd (%p2155_p3), %s388_s13, 4294967168  ;;  %s396_s19 = sand.u32 1, %s1740_s9   ;;  %s1175_s12 = sshll.u32 %s1976_s23, 4 }
  0xbd   : > { %s397_s25 = scalar_lea.sflag [#allocation6], %s396_s19  ;;  %s400_s29 = scalar_lea.vmem [#allocation5], %s1175_s12 }
  0xbe   : > { %1623 = dma.done.wait (%p2155_p3), %s397_s25, 512  }
  0xbf   : > { %1625 = vsyncadd (%p2155_p3), %s397_s25, 4294966784  ;;  %s409_s18 = scalar_lea.vmem [#allocation7], %s1175_s12  ;;  %s415_s10 = scalar_lea.sflag [#allocation9], %s396_s19 }
  0xc0   : > { %s418_s22 = scalar_lea.vmem [#allocation8], %s1979_s26 }
  0xc1   : > { %1627 = dma.done.wait (%p2155_p3), %s415_s10, 128  }
  0xc2   : > { %1629 = vsyncadd (%p2155_p3), %s415_s10, 4294967168  ;;  %p2156_p11 = scmp.eq.s32.totalorder %s1740_s9, 0 }
  0xc4   : > { %1631 = dma.done.wait (%p2156_p11), [#allocation9], 1024   ;;  %p2157_p7 = pmov %p2156_p11 }
  0xc6   : > { %1633 = vsyncadd (%p2157_p7), [#allocation9], 4294966272  ;;  %p2158_p12 = pmov %p2157_p7 }
  0xc7   : > { %p2159_p8 = pmov %p2157_p7 }
  0xc8   : > { %1635 = dma.done.wait (%p2158_p12), [#allocation12], 1024  }
  0xc9   : > { %1637 = vsyncadd (%p2159_p8), [#allocation12], 4294966272  ;;  %v1667_v0 = vmov 0.0   ;;  %vm1668_vm0 = vmmov 0   ;;  %v478_v1 = vld [vmem:[%s391_s6] sm:$0xff]  ;;  %s1669_s16 = smov 112  }
  0xca   : > { %1222 = vmatprep.subr.mxu0 %v1667_v0  ;;  %1229 = vmatprep.subr.mxu1 %v1667_v0  ;;  %v480_v2 = vld [vmem:[%s400_s29 + $0x8] sm:$0xff]  ;;  %v479_v4 = vld [vmem:[%s400_s29] sm:$0xff]  ;;  %vm481_vm1 = vcmask 130048   ;;  %s1670_s14 = smov 32   ;;  %vm640_vm2 = vcmask 261120   ;;  %s2160_s7 = sld [smem:[#allocation29_spill]] }
  0xcb   : > { %1226 = vmatprep.mubr.msk.f32.mxu0 %vm1668_vm0, %v1667_v0  ;;  %1233 = vmatprep.mubr.msk.f32.mxu1 %vm1668_vm0, %v1667_v0  ;;  %v556_v3 = vld [vmem:[%s409_s18 + $0x8] sm:$0xff]  ;;  %v555_v5 = vld [vmem:[%s409_s18] sm:$0xff]  ;;  %s1671_s8 = smov 64   ;;  %s1672_s17 = smov 96  }
  0xcc   : > { %557 = vrot.lane.b32.xlu0 %v478_v1, %s1669_s16  ;;  %1223 = vmatpush3.msra.mxu0 %v480_v2  ;;  %v639_v6 = vld [vmem:[#allocation10 + $0x38] sm:$0xff]  ;;  %v638_v7 = vld [vmem:[#allocation10 + $0x30] sm:$0xff]  ;;  %v637_v8 = vld [vmem:[#allocation10 + $0x28] sm:$0xff]  ;;  %s2161_s27 = sld [smem:[#allocation25_spill]]  ;;  %s1191_s24 = sshll.u32 %s1740_s9, 7 }
  0xcd   : > { %1230 = vmatpush3.msra.mxu1 %v556_v3  ;;  %1224 = vmatprep.subr.mxu0 %v1667_v0  ;;  %v636_v9 = vld [vmem:[#allocation10 + $0x20] sm:$0xff]  ;;  %v635_v10 = vld [vmem:[#allocation10 + $0x18] sm:$0xff]  ;;  %v634_v12 = vld [vmem:[#allocation10 + $0x10] sm:$0xff]  ;;  %s477_s21 = scalar_lea.vmem [#allocation14], %s1979_s26  ;;  %s2162_s4 = sld [smem:[#allocation32_spill]] }
  0xce   : > { %1231 = vmatprep.subr.mxu1 %v1667_v0  ;;  %1225 = vmatpush3.msra.mxu0 %v479_v4  ;;  %v633_v13 = vld [vmem:[#allocation10 + $0x8] sm:$0xff]  ;;  %v632_v14 = vld [vmem:[#allocation10] sm:$0xff]  ;;  %v631_v15 = vld [vmem:[%s418_s22] sm:$0xff]  ;;  %s993_s1 = sshll.u32 %s477_s21, 4  ;;  %s980_s6 = scalar_lea.sflag [#allocation4], %s1976_s23  ;;  %s994_s1 = int_to_ptr.vmem [resolvable:$true] %s993_s1 }
  0xcf   : > { %1232 = vmatpush3.msra.mxu1 %v555_v5  ;;  %1227 = vmatmul.mubr.msk.f32.vlgmr.msra.gmra.mxu0 %vm481_vm1, %v478_v1  ;;  %v798_v18 = vld [vmem:[#allocation11 + $0x18] sm:$0xff]  ;;  %v797_v20 = vld [vmem:[#allocation11 + $0x10] sm:$0xff]  ;;  %v796_v22 = vld [vmem:[#allocation11 + $0x8] sm:$0xff]  ;;  %s1576_s19 = scalar_lea.vmem %s994_s1, 128  ;;  %s1673_s12 = smov [#allocation14]  }
  0xd0   : > { %1236 = vmatprep.subr.mxu0 %v1667_v0  ;;  %1247 = vmatprep.subr.mxu1 %v1667_v0  ;;  %v795_v23 = vld [vmem:[#allocation11] sm:$0xff]  ;;  %v883_v26 = vld [vmem:[#allocation13 + $0x18] sm:$0xff]  ;;  %v882_v27 = vld [vmem:[#allocation13 + $0x10] sm:$0xff]  ;;  %p1577_p9 = scmp.ne.s32.totalorder %s994_s1, %s1576_s19  ;;  %s1580_s25 = sshll.u32 %s1673_s12, 4  ;;  %s1581_s25 = int_to_ptr.vmem [resolvable:$false] %s1580_s25 }
  0xd1   : > { %1237 = vmatpush3.msra.mxu0 %v639_v6  ;;  %1244 = vmatprep.mubr.msk.f32.mxu0 %vm1668_vm0, %v1667_v0  ;;  %v881_v28 = vld [vmem:[#allocation13 + $0x8] sm:$0xff]  ;;  %v880_v29 = vld [vmem:[#allocation13] sm:$0xff]  ;;  %s1582_s9 = scalar_lea.vmem %s1581_s25, 256  ;;  %p1583_p4 = scmp.lt.s32.totalorder %s994_s1, %s1581_s25 }
  0xd2   : > { %1238 = vmatprep.subr.mxu0 %v1667_v0  ;;  %964 = vrot.lane.b32.xlu1 %v631_v15, %s1670_s14  ;;  %v1186_v33 = vld [vmem:[%s2160_s7] ss:$0 sm:$0xff]  ;;  %p2163_p10 = scmp.ne.s32.totalorder %s2161_s27, 0  ;;  %p1584_p6 = scmp.lt.s32.totalorder %s1582_s9, %s1576_s19 }
  0xd3   : > { %1239 = vmatpush3.msra.mxu0 %v638_v7  ;;  %s2054_s13 = scalar_lea.hbm %s2162_s4, %s1191_s24 }
  0xd4   : > { %1240 = vmatprep.subr.mxu0 %v1667_v0  ;;  %p1578_p1 = pnand %p1577_p9, %p2163_p10  ;;  %p1585_p13 = por %p1584_p6, %p1583_p4 }
  0xd5   : > { %1241 = vmatpush3.msra.mxu0 %v637_v8 }
  0xd6   : > { %1242 = vmatprep.subr.mxu0 %v1667_v0  ;;  %p1579_p5 = pneg %p1578_p1 }
  0xd7   : > { %1243 = vmatpush3.msra.mxu0 %v636_v9 }
  0xd8   : > { %1258 = vmatprep.subr.mxu0 %v1667_v0  ;;  %p1586_p2 = pnand %p1585_p13, %p1579_p5 }
 0x13e   : > { %v558_v11 = vpop.permute.xlu0 %557 }
 0x13f   : > { %1234 = vmatmul.mubr.msk.f32.vlgmr.msra.gmra.mxu1 %vm481_vm1, %v558_v11 }
 0x140   : > { %1248 = vmatpush3.msra.mxu1 %v635_v10  ;;  %1255 = vmatprep.mubr.msk.f32.mxu1 %vm1668_vm0, %v1667_v0 }
 0x141   : > { %1249 = vmatprep.subr.mxu1 %v1667_v0 }
 0x142   : > { %1250 = vmatpush3.msra.mxu1 %v634_v12 }
 0x143   : > { %1251 = vmatprep.subr.mxu1 %v1667_v0 }
 0x144   : > { %1252 = vmatpush3.msra.mxu1 %v633_v13  ;;  %v965_v48 = vpop.permute.xlu1 %964 }
 0x145   : > { %1253 = vmatprep.subr.mxu1 %v1667_v0 }
 0x146   : > { %1254 = vmatpush3.msra.mxu1 %v632_v14 }
 0x147   : > { %1269 = vmatprep.subr.mxu1 %v1667_v0 }
 0x18f   : > { %v551_v16 = vpop.f32.mrf.mxu0 }
 0x190   : > { %1256 = vmatmul.mubr.msk.f32.vlgmr.msra.gmra.mxu1 %vm640_vm2, %v551_v16 }
 0x191   : > { %v1228_v17 = vpop.f32.mrf.mxu0  ;;  %1277 = vmatprep.mubr.msk.f32.mxu1 %vm1668_vm0, %v1667_v0  ;;  %1270 = vmatpush3.msra.mxu1 %v883_v26 }
 0x192   : > { %1271 = vmatprep.subr.mxu1 %v1667_v0 }
 0x193   : > { %1272 = vmatpush3.msra.mxu1 %v882_v27 }
 0x194   : > { %1273 = vmatprep.subr.mxu1 %v1667_v0 }
 0x195   : > { %1274 = vmatpush3.msra.mxu1 %v881_v28 }
 0x196   : > { %1275 = vmatprep.subr.mxu1 %v1667_v0 }
 0x197   : > { %1276 = vmatpush3.msra.mxu1 %v880_v29 }
 0x1ff   : > { %v627_v19 = vpop.f32.mrf.mxu1 }
 0x200   : > { %1245 = vmatmul.mubr.msk.f32.vlgmr.msra.gmra.mxu0 %vm640_vm2, %v627_v19 }
 0x201   : > { %1259 = vmatpush3.msra.mxu0 %v798_v18  ;;  %v1235_v21 = vpop.f32.mrf.mxu1  ;;  %1266 = vmatprep.mubr.msk.f32.mxu0 %vm1668_vm0, %v1667_v0 }
 0x202   : > { %1260 = vmatprep.subr.mxu0 %v1667_v0 }
 0x203   : > { %1261 = vmatpush3.msra.mxu0 %v797_v20 }
 0x204   : > { %1262 = vmatprep.subr.mxu0 %v1667_v0 }
 0x205   : > { %1263 = vmatpush3.msra.mxu0 %v796_v22 }
 0x206   : > { %1264 = vmatprep.subr.mxu0 %v1667_v0 }
 0x207   : > { %1265 = vmatpush3.msra.mxu0 %v795_v23 }
 0x208   : > { %1267 = vmatmul.mubr.msk.f32.vlgmr.msra.gmra.mxu0 %vm640_vm2, %v631_v15 }
 0x250   : > { %v783_v24 = vpop.f32.mrf.mxu1 }
 0x252   : > { %v1257_v25 = vpop.f32.mrf.mxu1 }
 0x2c0   : > { %v710_v30 = vpop.f32.mrf.mxu0 }
 0x2c1   : > { %v784_v32 = vadd.f32 %v783_v24, %v710_v30 }
 0x2c2   : > { %v1246_v31 = vpop.f32.mrf.mxu0 }
 0x2c3   : > { %v794_v34 = vadd.f32 %v1186_v33, %v784_v32 }
 0x2c8   : > { %v868_v35 = vpop.f32.mrf.mxu0 }
 0x2c9   : > { %v872_v36 = vadd.f32 %v868_v35, %v794_v34 }
 0x2ca   : > { %v1268_v37 = vpop.f32.mrf.mxu0 }
 0x2cb   : > { %v1188_v38 = vmul.f32 -1.442695, %v872_v36 }
 0x2cd   : > { %1380 = vpow2.f32 %v1188_v38 }
 0x2da   : > { %v1381_v39 = vpop.eup %1380 }
 0x2db   : > { %v876_v40 = vadd.f32 1.0, %v1381_v39 }
 0x2dd   : > { %1382 = vrcp.f32 %v876_v40 }
 0x2ea   : > { %v1383_v41 = vpop.eup %1382 }
 0x2eb   : > { %v879_v42 = vmul.f32 %v1383_v41, %v631_v15  ;;  %v963_v49 = vsub.f32 1.0, %v1383_v41 }
 0x2ed   : > { %1278 = vmatmul.mubr.msk.f32.vlgmr.msra.gmra.mxu1 %vm640_vm2, %v879_v42  ;;  %v967_v51 = vmul.f32 %v965_v48, %v963_v49 }
 0x3ad   : > { %v953_v43 = vpop.f32.mrf.mxu1 }
 0x3ae   : > { %958 = vrot.lane.b32.xlu0 %v953_v43, %s1671_s8 }
 0x3af   : > { %v1279_v44 = vpop.f32.mrf.mxu1 }
 0x420   : > { %v959_v45 = vpop.permute.xlu0 %958 }
 0x421   : > { %v961_v46 = vadd.f32 %v959_v45, %v794_v34 }
 0x423   : > { %1384 = vtanh.f32 %v961_v46 }
 0x430   : > { %v1385_v47 = vpop.eup %1384 }
 0x431   : > { %969 = vrot.lane.b32.xlu1 %v1385_v47, %s1672_s17 }
 0x4a3   : > { %v970_v50 = vpop.permute.xlu1 %969 }
 0x4a4   : > { %v972_v52 = vmul.f32 %v1383_v41, %v970_v50 }
 0x4a6   : > { %v973_v53 = vadd.f32 %v972_v52, %v967_v51 }
 0x4a8   : > { %975 = vrot.lane.b32.xlu0 %v973_v53, %s1672_s17 }
 0x51a   : > { %v976_v54 = vpop.permute.xlu0 %975 }
 0x51b   : > { %978 = vst.msk [vmem:[%s477_s21] sm:$0xff] %vm640_vm2, %v976_v54 }
 0x51c   : > { %1589 = shalt.err (!%p1586_p2)
}
 0x51d   : > { %s1590_s26 = scalar_lea.hbm %s2054_s13, 128  ;;  %s1594_s18 = scalar_lea.hbm %s2162_s4, 256 }
 0x51e   : > { %p1591_p0 = scmp.ne.s32.totalorder %s2054_s13, %s1590_s26  ;;  %p1595_p7 = scmp.lt.s32.totalorder %s2054_s13, %s2162_s4 }
 0x51f   : > { %p1596_p12 = scmp.lt.s32.totalorder %s1594_s18, %s1590_s26 }
 0x520   : > { %p1592_p3 = pnand %p1591_p0, %p2163_p10 }
 0x521   : > { %p1597_p8 = por %p1596_p12, %p1595_p7 }
 0x522   : > { %p1593_p11 = pneg %p1592_p3 }
 0x524   : > { %p1598_p9 = pnand %p1597_p8, %p1593_p11 }
 0x526   : > { %1601 = shalt.err (!%p1598_p9)
}
 0x527   : > { %1300 = dma.vmem_to_hbm [thread:$0]  (%p2163_p10), %s994_s1, 128, %s2054_s13, %s980_s6  }
 0x528 PF: > { %s2164_s16 = sld [smem:[#allocation21_spill]]  ;;  %p2167_p5 = scmp.ge.s32.totalorder %s1656_s30, 2 }
 0x529   : > { %s2165_s14 = sld [smem:[#allocation26_spill]] }
 0x52e   : > { %s1005_s11 = sand.u32 1, %s2164_s16  }
 0x52f   : > { %p2166_p1 = scmp.ne.s32.totalorder %s2165_s14, 0  ;;  %s1006_s5 = scalar_lea.sflag [#allocation4], %s1005_s11 }
 0x531   : > { %p1326_p4 = pnand %p2167_p5, %p2166_p1 }
 0x533   : > { %p1327_p6 = pneg %p1326_p4 }
 0x535   : > { %1639 = dma.done.wait (%p1327_p6), %s1006_s5, 128  }
 0x536   : > { %1641 = vsyncadd (%p1327_p6), %s1006_s5, 4294967168  ;;  %s2168_s30 = sld [smem:[#allocation23_spill]]  ;;  %s2171_s27 = smov %s1648_s28 }
 0x537   : > { %s2169_s7 = sld [smem:[#allocation22_spill]] }
 0x538   : > { %s2170_s29 = sld [smem:[#allocation24_spill]] }
 0x53c   : > { %p28_p13 = scmp.ge.s32.totalorder %s2168_s30, 4  }
 0x53d   : > { %s2172_s28 = smov %s2169_s7 }
 0x53e   :  { %30 = sbr.rel (!%p28_p13) target bundleno = 17 (0x11), region = 146 }
 0x543   :  { %1011 = vsyncpa [#allocation3], 1 }
 0x544   :  { %1013 = vsyncpa [#allocation3 + $0x1], 1 }
 0x545   :  { %1014 = vsyncpa [#allocation6], 1 }
 0x546   :  { %1016 = vsyncpa [#allocation6 + $0x1], 1 }
 0x547   :  { %1017 = vsyncpa [#allocation9], 1 }
 0x548   :  { %1019 = vsyncpa [#allocation9 + $0x1], 1 }
 0x549   :  { %1020 = vsyncpa [#allocation12], 1 }
 0x54a   :  { %1021 = vsyncpa [#allocation4], 1 }
 0x54b   :  { %1023 = vsyncpa [#allocation4 + $0x1], 1 }

</bundles_post_ra>
